<compile_context>
chip_gen: v7x
topology: tpu7x:2x2x1
jax: 0.10.0
libtpu: 0.0.40
codegen_flags: <defaults>
</compile_context>

<pallas_src>
import jax
import jax.numpy as jnp
from jax.experimental import pallas as pl
from jax.experimental.pallas import tpu as pltpu


def mlp_residual_kernel(x_ref, w1_ref, b1_ref, w2_ref, b2_ref, o_ref):
    """Fused linear1 -> ReLU -> +residual -> linear2 on one (TM, d_in) row tile."""
    x = x_ref[...]                                                    # (TM, 100)
    h = jnp.dot(x, w1_ref[...], preferred_element_type=jnp.float32)   # (TM, 100)
    h = jnp.maximum(h + b1_ref[...], 0.0)                             # bias + ReLU
    h = h + x                                                         # residual (d_in == d_hid)
    y = jnp.dot(h, w2_ref[...], preferred_element_type=jnp.float32)   # (TM, 10)
    o_ref[...] = (y + b2_ref[...]).astype(o_ref.dtype)


def _round_up(n, m):
    return ((n + m - 1) // m) * m


def _choose_tile(batch, tm_max=2048, split_threshold=256):
    """Row-tile size: big tiles amortize the ~0.35us/step overhead, B is split
    as evenly as possible (no b_pad overshoot; last tile is masked), and B >=
    split_threshold forces >=2 grid steps so v7x megacore uses both TCs."""
    n_tiles = max(1, pl.cdiv(batch, tm_max))
    if n_tiles == 1 and batch >= split_threshold:
        n_tiles = 2
    tm = max(8, _round_up(pl.cdiv(batch, n_tiles), 8))
    return tm, pl.cdiv(batch, tm)


def prepare_params(w1, b1, w2, b2):
    """One-time layout prep: torch-style (out, in) -> (in, out) f32, biases as (1, out).

    No 128-lane padding anywhere: the kernel feeds the MXU natural 100/10-wide
    operands and lets Mosaic do the (exact) vreg padding/masking, keeping HBM
    reads/writes at the logical sizes.
    """
    d_hid, d_in = w1.shape
    d_out, d_hid2 = w2.shape
    assert d_hid == d_hid2, (w1.shape, w2.shape)
    assert d_in == d_hid, "residual add requires in_features == hidden_features"
    w1t = jnp.asarray(w1, jnp.float32).T            # (d_in,  d_hid)
    b1r = jnp.asarray(b1, jnp.float32).reshape(1, d_hid)
    w2t = jnp.asarray(w2, jnp.float32).T            # (d_hid, d_out)
    b2r = jnp.asarray(b2, jnp.float32).reshape(1, d_out)
    return w1t, b1r, w2t, b2r


def simple_module_forward(x, params, *, tm_max=2048):
    """x: (B, 100) float32; params: output of prepare_params. Returns (B, 10)."""
    w1t, b1r, w2t, b2r = params
    B, d_in = x.shape
    d_hid = w1t.shape[1]
    d_out = w2t.shape[1]
    assert w1t.shape[0] == d_in, (x.shape, w1t.shape)

    tm, n_tiles = _choose_tile(B, tm_max=tm_max)

    # Advisory cost hint so XLA can overlap this custom call with surrounding work.
    cost = pl.CostEstimate(
        flops=2 * B * d_in * d_hid + 2 * B * d_hid * d_out,
        transcendentals=0,
        bytes_accessed=4 * (B * d_in + B * d_out
                            + d_in * d_hid + d_hid + d_hid * d_out + d_out),
    )

    return pl.pallas_call(
        mlp_residual_kernel,
        out_shape=jax.ShapeDtypeStruct((B, d_out), x.dtype),
        grid=(n_tiles,),
        in_specs=[
            # x row-tile: pipelined/double-buffered across grid steps.  Last
            # (partial) tile reads past B are garbage rows whose writes Pallas
            # masks; the math is row-wise independent so valid rows are exact.
            pl.BlockSpec((tm, d_in), lambda i: (i, 0)),
            # Constant index_map => fetched once, stays resident in VMEM.
            # TODO(synk): pipeline_mode=pl.Buffered(1) would also drop their
            # unused second pipeline buffer (~120 KiB); pure hygiene, skipped.
            pl.BlockSpec((d_in, d_hid), lambda i: (0, 0)),     # w1 resident
            pl.BlockSpec((1, d_hid), lambda i: (0, 0)),        # b1 resident
            pl.BlockSpec((d_hid, d_out), lambda i: (0, 0)),    # w2 resident
            pl.BlockSpec((1, d_out), lambda i: (0, 0)),        # b2 resident
        ],
        # Unpadded (tm, 10) output block: full output width, so the HBM DMA is
        # contiguous and writeback traffic is minimal (no 128-lane padding).
        out_specs=pl.BlockSpec((tm, d_out), lambda i: (i, 0)),
        compiler_params=pltpu.CompilerParams(
            dimension_semantics=("parallel",),   # v7x megacore shards row tiles
        ),
        cost_estimate=cost,
    )(x, w1t, b1r, w2t, b2r)


def _ref_forward(x, w1, b1, w2, b2):
    h = jnp.maximum(x @ w1.T + b1, 0.0)
    h = h + x
    return h @ w2.T + b2


if __name__ == "__main__":
    key = jax.random.PRNGKey(0)
    kx, kw1, kb1, kw2, kb2 = jax.random.split(key, 5)

    B, D_IN, D_HID, D_OUT = 8, 100, 100, 10

    x = jax.random.normal(kx, (B, D_IN), dtype=jnp.float32)

    # Deterministic init mimicking nn.Linear default: U(-1/sqrt(fan_in), +1/sqrt(fan_in))
    bound1 = 1.0 / jnp.sqrt(jnp.float32(D_IN))
    w1 = jax.random.uniform(kw1, (D_HID, D_IN), minval=-bound1, maxval=bound1,
                            dtype=jnp.float32)
    b1 = jax.random.uniform(kb1, (D_HID,), minval=-bound1, maxval=bound1,
                            dtype=jnp.float32)

    bound2 = 1.0 / jnp.sqrt(jnp.float32(D_HID))
    w2 = jax.random.uniform(kw2, (D_OUT, D_HID), minval=-bound2, maxval=bound2,
                            dtype=jnp.float32)
    b2 = jax.random.uniform(kb2, (D_OUT,), minval=-bound2, maxval=bound2,
                            dtype=jnp.float32)

    params = prepare_params(w1, b1, w2, b2)   # one-time layout prep
    out = jax.block_until_ready(simple_module_forward(x, params))

    ref = _ref_forward(x, w1, b1, w2, b2)
    assert out.shape == (B, D_OUT), out.shape
    assert jnp.allclose(out, ref, atol=1e-4, rtol=1e-4), "mismatch vs reference"

    print("KERNEL_OK")
</pallas_src>

<mosaic_0001>
module attributes {stable_mosaic.version = 11 : i64} {
  func.func @mlp_residual_kernel(%arg0: i32, %arg1: memref<8x100xf32, #tpu.memory_space<vmem>>, %arg2: memref<100x100xf32, #tpu.memory_space<vmem>>, %arg3: memref<1x100xf32, #tpu.memory_space<vmem>>, %arg4: memref<100x10xf32, #tpu.memory_space<vmem>>, %arg5: memref<1x10xf32, #tpu.memory_space<vmem>>, %arg6: memref<8x10xf32, #tpu.memory_space<vmem>>) attributes {dimension_semantics = [#tpu.dimension_semantics<parallel>], iteration_bounds = array<i64: 1>, scalar_prefetch = 0 : i64, scratch_operands = 0 : i64, tpu.core_type = #tpu.core_type<tc>, window_params = [{transform_indices = @transform_0, window_bounds = array<i64: 8, 100>}, {pipeline_mode = #tpu.pipeline_mode<synchronous>, transform_indices = @transform_1, window_bounds = array<i64: 100, 100>}, {pipeline_mode = #tpu.pipeline_mode<synchronous>, transform_indices = @transform_2, window_bounds = array<i64: 1, 100>}, {pipeline_mode = #tpu.pipeline_mode<synchronous>, transform_indices = @transform_3, window_bounds = array<i64: 100, 10>}, {pipeline_mode = #tpu.pipeline_mode<synchronous>, transform_indices = @transform_4, window_bounds = array<i64: 1, 10>}, {transform_indices = @transform_5, window_bounds = array<i64: 8, 10>}]} {
    %c0 = arith.constant 0 : index
    %c0_0 = arith.constant 0 : index
    %0 = vector.load %arg1[%c0, %c0_0] : memref<8x100xf32, #tpu.memory_space<vmem>>, vector<8x100xf32>
    %c0_1 = arith.constant 0 : index
    %c0_2 = arith.constant 0 : index
    %1 = vector.load %arg2[%c0_1, %c0_2] : memref<100x100xf32, #tpu.memory_space<vmem>>, vector<100x100xf32>
    %cst = arith.constant dense<0.000000e+00> : vector<8x100xf32>
    %2 = tpu.matmul %0, %1, %cst {dimension_numbers = #tpu.dot_dimension_numbers<[1], [0], [0], [1], [0, 0, 1, 1], [], []>} : vector<8x100xf32>, vector<100x100xf32>, vector<8x100xf32> -> vector<8x100xf32>
    %c0_3 = arith.constant 0 : index
    %c0_4 = arith.constant 0 : index
    %3 = vector.load %arg3[%c0_3, %c0_4] : memref<1x100xf32, #tpu.memory_space<vmem>>, vector<1x100xf32>
    %4 = vector.broadcast %3 : vector<1x100xf32> to vector<8x100xf32>
    %5 = arith.addf %2, %4 : vector<8x100xf32>
    %cst_5 = arith.constant 0.000000e+00 : f32
    %6 = vector.broadcast %cst_5 : f32 to vector<8x100xf32>
    %7 = arith.maximumf %5, %6 : vector<8x100xf32>
    %8 = arith.addf %7, %0 : vector<8x100xf32>
    %c0_6 = arith.constant 0 : index
    %c0_7 = arith.constant 0 : index
    %9 = vector.load %arg4[%c0_6, %c0_7] : memref<100x10xf32, #tpu.memory_space<vmem>>, vector<100x10xf32>
    %cst_8 = arith.constant dense<0.000000e+00> : vector<8x10xf32>
    %10 = tpu.matmul %8, %9, %cst_8 {dimension_numbers = #tpu.dot_dimension_numbers<[1], [0], [0], [1], [0, 0, 1, 1], [], []>} : vector<8x100xf32>, vector<100x10xf32>, vector<8x10xf32> -> vector<8x10xf32>
    %c0_9 = arith.constant 0 : index
    %c0_10 = arith.constant 0 : index
    %11 = vector.load %arg5[%c0_9, %c0_10] : memref<1x10xf32, #tpu.memory_space<vmem>>, vector<1x10xf32>
    %12 = vector.broadcast %11 : vector<1x10xf32> to vector<8x10xf32>
    %13 = arith.addf %10, %12 : vector<8x10xf32>
    %c0_11 = arith.constant 0 : index
    %c0_12 = arith.constant 0 : index
    %14 = vector.load %arg6[%c0_11, %c0_12] : memref<8x10xf32, #tpu.memory_space<vmem>>, vector<8x10xf32>
    tpu.vector_store %arg6[%c0_11, %c0_12], %13 {strides = array<i32>} : memref<8x10xf32, #tpu.memory_space<vmem>>, vector<8x10xf32>,
    return
  }
  func.func @transform_0(%arg0: i32) -> (i32, i32) {
    %c0_i32 = arith.constant 0 : i32
    %c0_i32_0 = arith.constant 0 : i32
    return %arg0, %c0_i32 : i32, i32
  }
  func.func @transform_1(%arg0: i32) -> (i32, i32) {
    %c0_i32 = arith.constant 0 : i32
    %c0_i32_0 = arith.constant 0 : i32
    %c0_i32_1 = arith.constant 0 : i32
    return %c0_i32, %c0_i32_0 : i32, i32
  }
  func.func @transform_2(%arg0: i32) -> (i32, i32) {
    %c0_i32 = arith.constant 0 : i32
    %c0_i32_0 = arith.constant 0 : i32
    %c0_i32_1 = arith.constant 0 : i32
    return %c0_i32, %c0_i32_0 : i32, i32
  }
  func.func @transform_3(%arg0: i32) -> (i32, i32) {
    %c0_i32 = arith.constant 0 : i32
    %c0_i32_0 = arith.constant 0 : i32
    %c0_i32_1 = arith.constant 0 : i32
    return %c0_i32, %c0_i32_0 : i32, i32
  }
  func.func @transform_4(%arg0: i32) -> (i32, i32) {
    %c0_i32 = arith.constant 0 : i32
    %c0_i32_0 = arith.constant 0 : i32
    %c0_i32_1 = arith.constant 0 : i32
    return %c0_i32, %c0_i32_0 : i32, i32
  }
  func.func @transform_5(%arg0: i32) -> (i32, i32) {
    %c0_i32 = arith.constant 0 : i32
    %c0_i32_0 = arith.constant 0 : i32
    return %arg0, %c0_i32 : i32, i32
  }
}

</mosaic_0001>

<bundles_post_ra>
// kernel: tpu_custom_call.1
= control target key start
LH: loop header
LB: loop body
LE: loop exit
PB: predicated region body
PF: predicated region fallthrough
CT: control target
= control target key end

     0   :  { %v390_v3 = vmov 0.0|0.0   ;;  %vm391_vm0 = vmmov 0   ;;  %v392_v6 = vmov 0.0   ;;  %s529_s0 = inlined_call_operand.vmem [shape: f32[8,100], index: 0, kind: input, shape index: {}]   ;;  %s530_s1 = inlined_call_operand.vmem [shape: f32[100,100], index: 1, kind: input, shape index: {}]   ;;  %s531_s2 = inlined_call_operand.vmem [shape: f32[1,100], index: 2, kind: input, shape index: {}]   ;;  %s532_s3 = inlined_call_operand.vmem [shape: f32[100,10], index: 3, kind: input, shape index: {}]   ;;  %s533_s4 = inlined_call_operand.vmem [shape: f32[1,10], index: 4, kind: input, shape index: {}]   ;;  %s534_s5 = inlined_call_operand.hbm [shape: f32[8,10], index: 5, kind: output, shape index: {}]  }
   0x1   :  { %v22_v0 = vld [vmem:[%s530_s1] sm:$0xff]  ;;  %v23_v1 = vld [vmem:[%s530_s1 + $0x8] sm:$0xff]  ;;  %v24_v2 = vld [vmem:[%s530_s1 + $0x10] sm:$0xff]  ;;  %326 = vmatprep.subr.bf16.mxu0 %v390_v3  ;;  %344 = vmatprep.subr.bf16.mxu1 %v390_v3 }
   0x2   :  { %v327_v4 = vpack.c.bf16 %v23_v1, %v22_v0  ;;  %v25_v5 = vld [vmem:[%s530_s1 + $0x18] sm:$0xff]  ;;  %294 = vmatprep.mubr.msk.f32.mxu0 %vm391_vm0, %v392_v6  ;;  %323 = vmatprep.mubr.msk.f32.mxu1 %vm391_vm0, %v392_v6  ;;  %v26_v8 = vld [vmem:[%s530_s1 + $0x20] sm:$0xff]  ;;  %v27_v9 = vld [vmem:[%s530_s1 + $0x28] sm:$0xff] }
   0x3   :  { %v330_v7 = vpack.c.bf16 %v25_v5, %v24_v2  ;;  %v122_v10 = vld [vmem:[%s532_s3] sm:$0xff]  ;;  %v123_v11 = vld [vmem:[%s532_s3 + $0x8] sm:$0xff]  ;;  %v124_v12 = vld [vmem:[%s532_s3 + $0x10] sm:$0xff]  ;;  %v333_v15 = vpack.c.bf16 %v27_v9, %v26_v8 }
   0x4   :  { %328 = vmatpush3.bf16.msra.mxu0 %v327_v4  ;;  %v125_v13 = vld [vmem:[%s532_s3 + $0x18] sm:$0xff]  ;;  %v345_v14 = vpack.c.bf16 %v123_v11, %v122_v10  ;;  %v28_v16 = vld [vmem:[%s530_s1 + $0x30] sm:$0xff] }
   0x5   :  { %329 = vmatprep.subr.bf16.mxu0 %v390_v3  ;;  %v29_v17 = vld [vmem:[%s530_s1 + $0x38] sm:$0xff]  ;;  %v348_v18 = vpack.c.bf16 %v125_v13, %v124_v12 }
   0x6   :  { %346 = vmatpush3.bf16.msra.mxu1 %v345_v14 }
   0x8   :  { %331 = vmatpush3.bf16.msra.mxu0 %v330_v7 }
   0x9   :  { %332 = vmatprep.subr.bf16.mxu0 %v390_v3 }
   0xa   :  { %10 = vsyncpa [#allocation3], 0  ;;  %347 = vmatprep.subr.bf16.mxu1 %v390_v3  ;;  %v126_v19 = vld [vmem:[%s532_s3 + $0x20] sm:$0xff]  ;;  %v127_v20 = vld [vmem:[%s532_s3 + $0x28] sm:$0xff]  ;;  %v336_v21 = vpack.c.bf16 %v29_v17, %v28_v16  ;;  %vm46_vm1 = vcmask 1043456   ;;  %vm42_vm2 = vcmask 818176  }
   0xb   :  { %v30_v22 = vld [vmem:[%s530_s1 + $0x40] sm:$0xff]  ;;  %v31_v23 = vld [vmem:[%s530_s1 + $0x48] sm:$0xff]  ;;  %349 = vmatpush3.bf16.msra.mxu1 %v348_v18  ;;  %v351_v24 = vpack.c.bf16 %v127_v20, %v126_v19  ;;  %v128_v25 = vld [vmem:[%s532_s3 + $0x30] sm:$0xff]  ;;  %s393_s24 = smov [#allocation2]   ;;  %vm218_vm3 = vcmask 80896  }
   0xc   :  { %334 = vmatpush3.bf16.msra.mxu0 %v333_v15  ;;  %350 = vmatprep.subr.bf16.mxu1 %v390_v3  ;;  %v129_v26 = vld [vmem:[%s532_s3 + $0x38] sm:$0xff]  ;;  %v339_v27 = vpack.c.bf16 %v31_v23, %v30_v22  ;;  %v32_v28 = vld [vmem:[%s530_s1 + $0x50] sm:$0xff]  ;;  %v130_v31 = vld [vmem:[%s532_s3 + $0x40] sm:$0xff]  ;;  %s226_s25 = sshll.u32 %s393_s24, 4  ;;  %s227_s25 = int_to_ptr.vmem [resolvable:$true] %s226_s25 }
   0xd   :  { %335 = vmatprep.subr.bf16.mxu0 %v390_v3  ;;  %v33_v29 = vld [vmem:[%s530_s1 + $0x58] sm:$0xff]  ;;  %v354_v30 = vpack.c.bf16 %v129_v26, %v128_v25  ;;  %v131_v32 = vld [vmem:[%s532_s3 + $0x48] sm:$0xff]  ;;  %v34_v35 = vld [vmem:[%s530_s1 + $0x60] sm:$0xf]  ;;  %p371_p1 = scmp.lt.s32.totalorder %s227_s25, %s227_s25 }
   0xe   :  { %v342_v33 = vpack.c.bf16 %v33_v29, %v32_v28  ;;  %v357_v34 = vpack.c.bf16 %v131_v32, %v130_v31  ;;  %v21_v36 = vld [vmem:[%s529_s0] sm:$0xff]  ;;  %v132_v37 = vld [vmem:[%s532_s3 + $0x50] sm:$0xff]  ;;  %v133_v38 = vld [vmem:[%s532_s3 + $0x58] sm:$0xff] }
   0xf   :  { %352 = vmatpush3.bf16.msra.mxu1 %v351_v24  ;;  %v360_v39 = vpack.c.bf16 %v133_v38, %v132_v37  ;;  %v134_v40 = vld [vmem:[%s532_s3 + $0x60] sm:$0xf] }
  0x10   :  { %337 = vmatpush3.bf16.msra.mxu0 %v336_v21  ;;  %353 = vmatprep.subr.bf16.mxu1 %v390_v3  ;;  %v234_v41 = vld [vmem:[%s531_s2] ss:$0 sm:$0xff]  ;;  %s366_s2 = scalar_lea.vmem %s227_s25, 128 }
  0x11   :  { %338 = vmatprep.subr.bf16.mxu0 %v390_v3  ;;  %v237_v47 = vld [vmem:[%s533_s4] ss:$0 sm:$0xff]  ;;  %p367_p0 = scmp.ne.s32.totalorder %s227_s25, %s366_s2  ;;  %p372_p2 = scmp.lt.s32.totalorder %s366_s2, %s366_s2 }
  0x13   :  { %355 = vmatpush3.bf16.msra.mxu1 %v354_v30  ;;  %p373_p3 = por %p372_p2, %p371_p1 }
  0x14   :  { %340 = vmatpush3.bf16.msra.mxu0 %v339_v27  ;;  %356 = vmatprep.subr.bf16.mxu1 %v390_v3 }
  0x15   :  { %341 = vmatprep.subr.bf16.mxu0 %v390_v3  ;;  %p374_p4 = pnand %p373_p3, %p367_p0 }
  0x17   :  { %358 = vmatpush3.bf16.msra.mxu1 %v357_v34 }
  0x18   :  { %343 = vmatpush3.bf16.msra.mxu0 %v342_v33  ;;  %359 = vmatprep.subr.bf16.mxu1 %v390_v3 }
  0x19   :  { %292 = vmatprep.subr.mxu0 %v392_v6 }
  0x1b   :  { %361 = vmatpush3.bf16.msra.mxu1 %v360_v39 }
  0x1c   :  { %293 = vmatpush3.msk.msra.mxu0 %vm46_vm1, %v34_v35  ;;  %321 = vmatprep.subr.mxu1 %v392_v6 }
  0x1d   :  { %295 = vmatmul.mubr.msk.f32.vlgmr.msra.gmra.mrb[0].mxu0 %vm42_vm2, %v21_v36 }
  0x1f   :  { %322 = vmatpush3.msk.msra.mxu1 %vm46_vm1, %v134_v40 }
  0xf0   :  { %v116_v42 = vpop.f32.mrb[0].mxu0 }
  0xf1   :  { %v117_v43 = vadd.f32 %v234_v41, %v116_v42  ;;  %v296_v44 = vpop.f32.mrb[1].mxu0 }
  0xf3   :  { %v120_v45 = vmax.f32 %v117_v43, 0.0 }
  0xf5   :  { %v121_v46 = vadd.f32 %v120_v45, %v21_v36 }
  0xf7   :  { %324 = vmatmul.mubr.msk.f32.vlgmr.msra.gmra.mrb[0].mxu1 %vm42_vm2, %v121_v46 }
 0x1ca   :  { %v214_v48 = vpop.f32.mrb[0].mxu1 }
 0x1cb   :  { %v215_v49 = vadd.f32 %v237_v47, %v214_v48  ;;  %v325_v50 = vpop.f32.mrb[1].mxu1 }
 0x1cd   :  { %219 = vst.msk [vmem:[#allocation2] sm:$0xff] %vm218_vm3, %v215_v49 }
 0x1ce   :  { %377 = shalt.err (!%p374_p4)
}
 0x1cf   :  { %s378_s27 = scalar_lea.hbm %s534_s5, 128 }
 0x1d0   :  { %p379_p5 = scmp.ne.s32.totalorder %s534_s5, %s378_s27  ;;  %p382_p6 = scmp.lt.u32.totalorder %s378_s27, %s534_s5 }
 0x1d2   :  { %p384_p7 = pnand %p382_p6, %p379_p5 }
 0x1d4   :  { %387 = shalt.err (!%p384_p7)
}
 0x1d5   :  { %229 = dma.vmem_to_hbm [thread:$0]  %s227_s25, 128, %s534_s5, [#allocation3]  }
 0x1d6   :  { %388 = dma.done.wait [#allocation3], 128  }
 0x1d7   :  { %389 = vsyncadd [#allocation3], 4294967168 }
 0x1d8   :  { %233 = vsyncpa [#allocation3], 1 }

</bundles_post_ra>
